<compile_context>
chip_gen: v7x
topology: tpu7x:2x2x1
jax: 0.10.0
libtpu: 0.0.40
codegen_flags: <defaults>
</compile_context>

<pallas_src>
import functools

import jax
import jax.numpy as jnp
from jax import lax
from jax.experimental import pallas as pl
from jax.experimental.pallas import tpu as pltpu

LANE_W = 1024  # lane-dense slab width (multiple of 128)

# Block-row budget: bigger blocks on 128-MiB-VMEM chips (v5e/v6e), conservative
# on v7x (64 MiB per TC) or when detection fails.
try:
    _VMEM_CAP = int(pltpu.get_tpu_info().vmem_capacity_bytes)
except Exception:  # best-effort; fall back to the conservative setting
    _VMEM_CAP = 64 * 1024 * 1024
MAX_BLOCK_ROWS = 1024 if _VMEM_CAP >= 128 * 1024 * 1024 else 512
_VMEM_LIMIT = 64 * 1024 * 1024 if MAX_BLOCK_ROWS >= 1024 else 40 * 1024 * 1024


def _round_up(x, m):
    return ((x + m - 1) // m) * m


def _focal_elementwise(x, y, alpha, gamma, *, approx):
    """Focal-modulated BCE-with-logits, elementwise in f32 (trimmed EUP/VALU)."""
    x = x.astype(jnp.float32)
    y = y.astype(jnp.float32)
    t = jnp.exp(-jnp.abs(x))                       # single EUP exp, reused below
    # Numerically stable BCE with logits: max(x,0) - x*y + log1p(exp(-|x|)).
    bce = jnp.maximum(x, 0.0) - x * y + jnp.log1p(t)
    denom = 1.0 + t
    inv = pl.reciprocal(denom, approx=True) if approx else 1.0 / denom
    p = jnp.where(x >= 0.0, inv, t * inv)          # sigmoid(x) rebuilt from t
    # 1 - p_t with p_t = y*p + (1-y)*(1-p) folds to p + y*(1-2p). The fold drops
    # the explicit clamp, which is safe for labels in [0, 1] (BCE targets).
    f = p + y * (1.0 - 2.0 * p)
    alpha_factor = (1.0 - alpha) + y * (2.0 * alpha - 1.0)
    if gamma == 1.5:
        modulating = f * jnp.sqrt(f)               # f**1.5 without exp/log
    elif gamma == 2.0:
        modulating = f * f
    elif gamma == 1.0:
        modulating = f
    elif gamma == 0.0:
        modulating = jnp.ones_like(f)
    else:
        modulating = jnp.where(f > 0.0, f ** gamma, 0.0)
    return bce * alpha_factor * modulating


def _focal_reduce_kernel(pred_ref, true_ref, out_ref, acc_ref, *, alpha, gamma,
                         rows, block_rows, total_blocks, blocks_per_core,
                         has_phantom):
    """Focal loss reduced per block into a small (<=8, LANE_W) VMEM scratch."""
    c = pl.program_id(0)
    i = pl.program_id(1)

    @pl.when(i == 0)
    def _init():
        acc_ref[...] = jnp.zeros_like(acc_ref)

    block_id = c * blocks_per_core + i

    def _accumulate():
        loss = _focal_elementwise(pred_ref[...], true_ref[...], alpha, gamma,
                                  approx=True)
        if rows % block_rows != 0:
            # Ragged tail handled in-kernel: mask rows past the end of the slab
            # (the overhanging region of the last block holds unspecified data).
            base = jnp.minimum(block_id, total_blocks - 1) * block_rows
            row_ids = base + lax.broadcasted_iota(
                jnp.int32, (block_rows, LANE_W), 0)
            loss = jnp.where(row_ids < rows, loss, 0.0)
        if block_rows % 8 == 0:
            # Reduce the block to an (8, LANE_W) partial before touching the
            # accumulator: splitting the sublane-major dim on an 8-row boundary
            # is layout-free, so the acc RMW is 8 rows instead of block_rows.
            acc_ref[...] += loss.reshape(block_rows // 8, 8, LANE_W).sum(axis=0)
        else:  # tiny input: block_rows == rows < 8, scratch matches the block
            acc_ref[...] += loss

    if not has_phantom:
        _accumulate()
    else:
        # Phantom trailing blocks (clamped in the index map) contribute nothing.
        pl.when(block_id < total_blocks)(_accumulate)

    @pl.when(i == pl.num_programs(1) - 1)
    def _finish():
        # One cross-sublane reduce per core, on the otherwise-idle XLU slot.
        out_ref[...] = jnp.sum(acc_ref[...], axis=0, keepdims=True)[None]


def _focal_none_kernel(pred_ref, true_ref, out_ref, *, alpha, gamma):
    out_ref[...] = _focal_elementwise(
        pred_ref[...], true_ref[...], alpha, gamma, approx=False
    ).astype(out_ref.dtype)


def _as_slab(pred, true, n):
    """Flatten to lane-dense (rows, LANE_W) slabs.

    Pads at most one tail row (pred=-100 / true=0 gives ~exactly-zero loss) so
    the reshape is legal; no pad / no copy when n is a multiple of LANE_W.
    """
    pred_f = pred.reshape(-1)
    true_f = true.reshape(-1)
    tail = (-n) % LANE_W
    if tail:
        pred_f = jnp.pad(pred_f, (0, tail), constant_values=-100.0)
        true_f = jnp.pad(true_f, (0, tail), constant_values=0.0)
    rows = (n + tail) // LANE_W
    return pred_f.reshape(rows, LANE_W), true_f.reshape(rows, LANE_W), rows


def focal_loss(pred, true, *, gamma=1.5, alpha=0.25, reduction="mean"):
    """Pallas implementation of FocalLoss(BCEWithLogitsLoss(reduction=reduction))."""
    orig_shape = pred.shape
    n = int(pred.size)
    pred2, true2, rows = _as_slab(pred, true, n)

    if reduction in ("mean", "sum"):
        # Adaptive block size: split across 2 cores when there is enough work,
        # cap by the per-chip VMEM budget.
        if rows < 8:
            block_rows = rows                       # full-dim block (tiny input)
        else:
            block_rows = min(MAX_BLOCK_ROWS, _round_up(pl.cdiv(rows, 2), 8))
        total_blocks = pl.cdiv(rows, block_rows)
        n_cores = 2 if total_blocks >= 2 else 1     # megacore split (v7x / v5p)
        blocks_per_core = pl.cdiv(total_blocks, n_cores)
        has_phantom = n_cores * blocks_per_core != total_blocks
        acc_rows = 8 if block_rows % 8 == 0 else block_rows

        if has_phantom:
            # Clamp out-of-range trailing block indices onto the last real
            # block; the kernel skips their contribution.
            in_map = lambda c, i: (
                jnp.minimum(c * blocks_per_core + i, total_blocks - 1), 0)
        else:
            in_map = lambda c, i: (c * blocks_per_core + i, 0)

        kern = functools.partial(
            _focal_reduce_kernel, alpha=alpha, gamma=gamma, rows=rows,
            block_rows=block_rows, total_blocks=total_blocks,
            blocks_per_core=blocks_per_core, has_phantom=has_phantom)

        partials = pl.pallas_call(
            kern,
            out_shape=jax.ShapeDtypeStruct((n_cores, 1, LANE_W), jnp.float32),
            grid=(n_cores, blocks_per_core),
            in_specs=[pl.BlockSpec((block_rows, LANE_W), in_map),
                      pl.BlockSpec((block_rows, LANE_W), in_map)],
            out_specs=pl.BlockSpec((1, 1, LANE_W), lambda c, i: (c, 0, 0)),
            scratch_shapes=[pltpu.VMEM((acc_rows, LANE_W), jnp.float32)],
            compiler_params=pltpu.CompilerParams(
                dimension_semantics=("parallel", "arbitrary"),
                vmem_limit_bytes=_VMEM_LIMIT),
        )(pred2, true2)
        total = jnp.sum(partials)
        if reduction == "mean":
            return total / jnp.float32(n)
        return total

    # Anything else behaves like PyTorch's fall-through: elementwise loss.
    out_dtype = jnp.promote_types(pred.dtype, true.dtype)
    block_rows = rows if rows < 8 else min(MAX_BLOCK_ROWS, _round_up(rows, 8))
    num_blocks = pl.cdiv(rows, block_rows)
    kern = functools.partial(_focal_none_kernel, alpha=alpha, gamma=gamma)
    out2d = pl.pallas_call(
        kern,
        out_shape=jax.ShapeDtypeStruct((rows, LANE_W), out_dtype),
        grid=(num_blocks,),
        in_specs=[pl.BlockSpec((block_rows, LANE_W), lambda i: (i, 0)),
                  pl.BlockSpec((block_rows, LANE_W), lambda i: (i, 0))],
        out_specs=pl.BlockSpec((block_rows, LANE_W), lambda i: (i, 0)),
        compiler_params=pltpu.CompilerParams(
            dimension_semantics=("parallel",),
            vmem_limit_bytes=_VMEM_LIMIT),
    )(pred2, true2)
    flat = out2d.reshape(-1)
    if flat.shape[0] != n:
        flat = flat[:n]
    return flat.reshape(orig_shape)


def _focal_loss_ref(pred, true, gamma=1.5, alpha=0.25, reduction="mean"):
    """Pure-JAX reference mirroring the PyTorch module (for verification)."""
    x = pred.astype(jnp.float32)
    y = true.astype(jnp.float32)
    bce = jnp.maximum(x, 0.0) - x * y + jnp.log1p(jnp.exp(-jnp.abs(x)))
    p = jax.nn.sigmoid(x)
    p_t = y * p + (1 - y) * (1 - p)
    loss = bce * (y * alpha + (1 - y) * (1 - alpha)) * (1.0 - p_t) ** gamma
    if reduction == "mean":
        return loss.mean()
    if reduction == "sum":
        return loss.sum()
    return loss


if __name__ == "__main__":
    # Small YOLO-like logits/targets: (batch=2, channels=4, H=16, W=16), NCHW.
    key = jax.random.PRNGKey(0)
    k1, k2 = jax.random.split(key)
    pred = jax.random.normal(k1, (2, 4, 16, 16), dtype=jnp.float32) * 2.0
    true = (jax.random.uniform(k2, (2, 4, 16, 16)) > 0.7).astype(jnp.float32)

    # Default wrapped loss is nn.BCEWithLogitsLoss() -> reduction='mean'.
    out = jax.block_until_ready(
        focal_loss(pred, true, gamma=1.5, alpha=0.25, reduction="mean"))
    ref = _focal_loss_ref(pred, true, gamma=1.5, alpha=0.25, reduction="mean")
    # Reduce paths use the approximate EUP reciprocal -> slightly looser rtol.
    assert jnp.allclose(out, ref, rtol=2e-3, atol=1e-6), (out, ref)

    # 'sum' reduction path.
    out_sum = jax.block_until_ready(focal_loss(pred, true, reduction="sum"))
    ref_sum = _focal_loss_ref(pred, true, reduction="sum")
    assert jnp.allclose(out_sum, ref_sum, rtol=2e-3, atol=1e-5), (out_sum, ref_sum)

    # 'none' (elementwise) path uses the exact reciprocal.
    out_none = jax.block_until_ready(focal_loss(pred, true, reduction="none"))
    ref_none = _focal_loss_ref(pred, true, reduction="none")
    assert jnp.allclose(out_none, ref_none, rtol=1e-4, atol=1e-6)

    print("KERNEL_OK")
</pallas_src>

<mosaic_0001>
module attributes {stable_mosaic.version = 11 : i64} {
  func.func @_focal_reduce_kernel(%arg0: i32, %arg1: i32, %arg2: memref<2x1024xf32, #tpu.memory_space<vmem>>, %arg3: memref<2x1024xf32, #tpu.memory_space<vmem>>, %arg4: memref<1x1x1024xf32, #tpu.memory_space<vmem>>, %arg5: memref<2x1024xf32, #tpu.memory_space<vmem>>) attributes {dimension_semantics = [#tpu.dimension_semantics<parallel>, #tpu.dimension_semantics<arbitrary>], iteration_bounds = array<i64: 1, 1>, scalar_prefetch = 0 : i64, scratch_operands = 1 : i64, tpu.core_type = #tpu.core_type<tc>, window_params = [{transform_indices = @transform_0, window_bounds = array<i64: 2, 1024>}, {transform_indices = @transform_1, window_bounds = array<i64: 2, 1024>}, {transform_indices = @transform_2, window_bounds = array<i64: 1, 1, 1024>}]} {
    %c0_i32 = arith.constant 0 : i32
    %0 = arith.cmpi eq, %arg1, %c0_i32 : i32
    %1 = arith.extui %0 : i1 to i32
    %c0_i32_0 = arith.constant 0 : i32
    %2 = arith.cmpi ne, %1, %c0_i32_0 : i32
    scf.if %2 {
      %cst_17 = arith.constant 0.000000e+00 : f32
      %42 = vector.broadcast %cst_17 : f32 to vector<2x1024xf32>
      %c0_18 = arith.constant 0 : index
      %c0_19 = arith.constant 0 : index
      %43 = vector.load %arg5[%c0_18, %c0_19] : memref<2x1024xf32, #tpu.memory_space<vmem>>, vector<2x1024xf32>
      tpu.vector_store %arg5[%c0_18, %c0_19], %42 {strides = array<i32>} : memref<2x1024xf32, #tpu.memory_space<vmem>>, vector<2x1024xf32>,
    } else {
    }
    %c0 = arith.constant 0 : index
    %c0_1 = arith.constant 0 : index
    %3 = vector.load %arg2[%c0, %c0_1] : memref<2x1024xf32, #tpu.memory_space<vmem>>, vector<2x1024xf32>
    %c0_2 = arith.constant 0 : index
    %c0_3 = arith.constant 0 : index
    %4 = vector.load %arg3[%c0_2, %c0_3] : memref<2x1024xf32, #tpu.memory_space<vmem>>, vector<2x1024xf32>
    %5 = math.absf %3 : vector<2x1024xf32>
    %cst = arith.constant 0.000000e+00 : f32
    %6 = vector.broadcast %cst : f32 to vector<2x1024xf32>
    %7 = arith.subf %6, %5 : vector<2x1024xf32>
    %8 = math.exp %7 : vector<2x1024xf32>
    %cst_4 = arith.constant 0.000000e+00 : f32
    %9 = vector.broadcast %cst_4 : f32 to vector<2x1024xf32>
    %10 = arith.maximumf %3, %9 : vector<2x1024xf32>
    %11 = arith.mulf %3, %4 : vector<2x1024xf32>
    %12 = arith.subf %10, %11 : vector<2x1024xf32>
    %13 = math.log1p %8 : vector<2x1024xf32>
    %14 = arith.addf %12, %13 : vector<2x1024xf32>
    %cst_5 = arith.constant 1.000000e+00 : f32
    %15 = vector.broadcast %cst_5 : f32 to vector<2x1024xf32>
    %16 = arith.addf %15, %8 : vector<2x1024xf32>
    %17 = tpu.reciprocal %16 {approx = true} : vector<2x1024xf32> -> vector<2x1024xf32>
    %cst_6 = arith.constant 0.000000e+00 : f32
    %18 = vector.broadcast %cst_6 : f32 to vector<2x1024xf32>
    %19 = arith.cmpf oge, %3, %18 : vector<2x1024xf32>
    %20 = arith.mulf %8, %17 : vector<2x1024xf32>
    %21 = arith.select %19, %17, %20 : vector<2x1024xi1>, vector<2x1024xf32>
    %cst_7 = arith.constant 2.000000e+00 : f32
    %22 = vector.broadcast %cst_7 : f32 to vector<2x1024xf32>
    %23 = arith.mulf %22, %21 : vector<2x1024xf32>
    %cst_8 = arith.constant 1.000000e+00 : f32
    %24 = vector.broadcast %cst_8 : f32 to vector<2x1024xf32>
    %25 = arith.subf %24, %23 : vector<2x1024xf32>
    %26 = arith.mulf %4, %25 : vector<2x1024xf32>
    %27 = arith.addf %21, %26 : vector<2x1024xf32>
    %cst_9 = arith.constant -5.000000e-01 : f32
    %28 = vector.broadcast %cst_9 : f32 to vector<2x1024xf32>
    %29 = arith.mulf %4, %28 : vector<2x1024xf32>
    %cst_10 = arith.constant 7.500000e-01 : f32
    %30 = vector.broadcast %cst_10 : f32 to vector<2x1024xf32>
    %31 = arith.addf %30, %29 : vector<2x1024xf32>
    %32 = math.sqrt %27 : vector<2x1024xf32>
    %33 = arith.mulf %27, %32 : vector<2x1024xf32>
    %34 = arith.mulf %14, %31 : vector<2x1024xf32>
    %35 = arith.mulf %34, %33 : vector<2x1024xf32>
    %c0_11 = arith.constant 0 : index
    %c0_12 = arith.constant 0 : index
    %36 = vector.load %arg5[%c0_11, %c0_12] : memref<2x1024xf32, #tpu.memory_space<vmem>>, vector<2x1024xf32>
    %37 = arith.addf %36, %35 : vector<2x1024xf32>
    %c0_13 = arith.constant 0 : index
    %c0_14 = arith.constant 0 : index
    %38 = vector.load %arg5[%c0_13, %c0_14] : memref<2x1024xf32, #tpu.memory_space<vmem>>, vector<2x1024xf32>
    tpu.vector_store %arg5[%c0_13, %c0_14], %37 {strides = array<i32>} : memref<2x1024xf32, #tpu.memory_space<vmem>>, vector<2x1024xf32>,
    %c0_i32_15 = arith.constant 0 : i32
    %39 = arith.cmpi eq, %arg1, %c0_i32_15 : i32
    %40 = arith.extui %39 : i1 to i32
    %c0_i32_16 = arith.constant 0 : i32
    %41 = arith.cmpi ne, %40, %c0_i32_16 : i32
    scf.if %41 {
      %c0_17 = arith.constant 0 : index
      %c0_18 = arith.constant 0 : index
      %42 = vector.load %arg5[%c0_17, %c0_18] : memref<2x1024xf32, #tpu.memory_space<vmem>>, vector<2x1024xf32>
      %cst_19 = arith.constant dense<0.000000e+00> : vector<1024xf32>
      %43 = vector.multi_reduction <add>, %42, %cst_19 [0] : vector<2x1024xf32> to vector<1024xf32>
      %44 = vector.shape_cast %43 : vector<1024xf32> to vector<1x1024xf32>
      %45 = vector.shape_cast %44 : vector<1x1024xf32> to vector<1x1x1024xf32>
      %c0_20 = arith.constant 0 : index
      %c0_21 = arith.constant 0 : index
      %c0_22 = arith.constant 0 : index
      %46 = vector.load %arg4[%c0_20, %c0_21, %c0_22] : memref<1x1x1024xf32, #tpu.memory_space<vmem>>, vector<1x1x1024xf32>
      tpu.vector_store %arg4[%c0_20, %c0_21, %c0_22], %45 {strides = array<i32>} : memref<1x1x1024xf32, #tpu.memory_space<vmem>>, vector<1x1x1024xf32>,
    } else {
    }
    return
  }
  func.func @transform_0(%arg0: i32, %arg1: i32) -> (i32, i32) {
    %c1_i32 = arith.constant 1 : i32
    %0 = arith.muli %arg0, %c1_i32 : i32
    %1 = arith.addi %0, %arg1 : i32
    %c0_i32 = arith.constant 0 : i32
    %c0_i32_0 = arith.constant 0 : i32
    return %1, %c0_i32 : i32, i32
  }
  func.func @transform_1(%arg0: i32, %arg1: i32) -> (i32, i32) {
    %c1_i32 = arith.constant 1 : i32
    %0 = arith.muli %arg0, %c1_i32 : i32
    %1 = arith.addi %0, %arg1 : i32
    %c0_i32 = arith.constant 0 : i32
    %c0_i32_0 = arith.constant 0 : i32
    return %1, %c0_i32 : i32, i32
  }
  func.func @transform_2(%arg0: i32, %arg1: i32) -> (i32, i32, i32) {
    %c0_i32 = arith.constant 0 : i32
    %c0_i32_0 = arith.constant 0 : i32
    %c0_i32_1 = arith.constant 0 : i32
    return %arg0, %c0_i32, %c0_i32_0 : i32, i32, i32
  }
}

</mosaic_0001>

<bundles_post_ra>
// kernel: tpu_custom_call.1
= control target key start
LH: loop header
LB: loop body
LE: loop exit
PB: predicated region body
PF: predicated region fallthrough
CT: control target
= control target key end

     0   :  { %7 = vsyncpa [#allocation4], 0  ;;  %s480_s0 = inlined_call_operand.hbm [shape: f32[2,1024], index: 0, kind: input, shape index: {}]   ;;  %s481_s1 = inlined_call_operand.hbm [shape: f32[2,1024], index: 1, kind: input, shape index: {}]   ;;  %s482_s2 = inlined_call_operand.hbm [shape: f32[1,1,1024], index: 2, kind: output, shape index: {}]  }
   0x1   :  { %8 = vsyncpa [#allocation7], 0 }
   0x2   :  { %9 = vsyncpa [#allocation5], 0  ;;  %s412_s9 = smov [#allocation3]   ;;  %s413_s11 = smov [#allocation6]  }
   0x3   :  { %s20_s10 = sshll.u32 %s412_s9, 4  ;;  %s34_s12 = sshll.u32 %s413_s11, 4  ;;  %s21_s10 = int_to_ptr.vmem [resolvable:$true] %s20_s10  ;;  %s35_s12 = int_to_ptr.vmem [resolvable:$true] %s34_s12 }
   0x4   :  { %s340_s15 = scalar_lea.hbm %s480_s0, 256 }
   0x5   :  { %p341_p0 = scmp.ne.s32.totalorder %s480_s0, %s340_s15  ;;  %p344_p1 = scmp.lt.u32.totalorder %s340_s15, %s480_s0 }
   0x7   :  { %p346_p2 = pnand %p344_p1, %p341_p0 }
   0x9   :  { %349 = shalt.err (!%p346_p2)
}
   0xa   :  { %s350_s20 = scalar_lea.vmem %s21_s10, 256  ;;  %p355_p4 = scmp.lt.s32.totalorder %s21_s10, %s21_s10 }
   0xb   :  { %p351_p3 = scmp.ne.s32.totalorder %s21_s10, %s350_s20  ;;  %p356_p5 = scmp.lt.s32.totalorder %s350_s20, %s350_s20 }
   0xd   :  { %p357_p6 = por %p356_p5, %p355_p4 }
   0xf   :  { %p358_p7 = pnand %p357_p6, %p351_p3 }
  0x11   :  { %361 = shalt.err (!%p358_p7)
}
  0x12   :  { %23 = dma.hbm_to_vmem [thread:$0]  %s480_s0, 256, %s21_s10, [#allocation4]  }
  0x13   :  { %s362_s25 = scalar_lea.hbm %s481_s1, 256 }
  0x14   :  { %p363_p8 = scmp.ne.s32.totalorder %s481_s1, %s362_s25  ;;  %p366_p9 = scmp.lt.u32.totalorder %s362_s25, %s481_s1 }
  0x16   :  { %p368_p10 = pnand %p366_p9, %p363_p8 }
  0x18   :  { %371 = shalt.err (!%p368_p10)
}
  0x19   :  { %s372_s30 = scalar_lea.vmem %s35_s12, 256  ;;  %p377_p12 = scmp.lt.s32.totalorder %s35_s12, %s35_s12 }
  0x1a   :  { %p373_p11 = scmp.ne.s32.totalorder %s35_s12, %s372_s30  ;;  %p378_p13 = scmp.lt.s32.totalorder %s372_s30, %s372_s30 }
  0x1c   :  { %p379_p0 = por %p378_p13, %p377_p12 }
  0x1e   :  { %p380_p1 = pnand %p379_p0, %p373_p11 }
  0x20   :  { %383 = shalt.err (!%p380_p1)
}
  0x21   :  { %37 = dma.hbm_to_vmem [thread:$0]  %s481_s1, 256, %s35_s12, [#allocation7]  }
  0x22   :  { %406 = dma.done.wait [#allocation4], 256  }
  0x23   :  { %407 = vsyncadd [#allocation4], 4294967040 }
  0x24   :  { %408 = dma.done.wait [#allocation7], 256  }
  0x25   :  { %409 = vsyncadd [#allocation7], 4294967040  ;;  %v52_v0 = vld [vmem:[#allocation3] sm:$0xff]  ;;  %v53_v1 = vld [vmem:[#allocation3 + $0x8] sm:$0xff]  ;;  %v414_v46 = vmov 1983009808   ;;  %v149_v48 = vlaneseq }
  0x26   :  { %v56_v2 = vand.u32 2147483647, %v52_v0  ;;  %v57_v3 = vand.u32 2147483647, %v53_v1  ;;  %vm94_vm0 = vcmp.ge.f32.partialorder %v52_v0, 0.0  ;;  %vm95_vm1 = vcmp.ge.f32.partialorder %v53_v1, 0.0 }
  0x27   :  { %v54_v19 = vld [vmem:[#allocation6] sm:$0xff]  ;;  %v55_v21 = vld [vmem:[#allocation6 + $0x8] sm:$0xff]  ;;  %v64_v36 = vmax.f32 %v52_v0, 0.0  ;;  %v65_v38 = vmax.f32 %v53_v1, 0.0  ;;  %v147_v47 = vunpack.c.l.s4 %v414_v46  ;;  %v456_v56 = vshrl.u32 %v149_v48, 7  ;;  %s416_s1 = smov [#allocation8]  }
  0x28   :  { %v58_v4 = vsub.f32 0.0, %v56_v2  ;;  %v59_v5 = vsub.f32 0.0, %v57_v3  ;;  %v66_v37 = vmul.f32 %v54_v19, %v52_v0  ;;  %v67_v39 = vmul.f32 %v55_v21, %v53_v1  ;;  %s309_s4 = sshll.u32 %s416_s1, 4  ;;  %s310_s4 = int_to_ptr.vmem [resolvable:$true] %s309_s4 }
  0x29   :  { %v108_v45 = vmul.f32 -0.5, %v54_v19  ;;  %v109_v51 = vmul.f32 -0.5, %v55_v21  ;;  %v148_v55 = vunpack.c.0.s8 %v147_v47  ;;  %vm187_vm8 = vcmask 1041408   ;;  %s384_s5 = scalar_lea.vmem %s310_s4, 128  ;;  %p389_p3 = scmp.lt.s32.totalorder %s310_s4, %s310_s4 }
  0x2a   :  { %v60_v6 = vmul.f32 1.442695, %v58_v4  ;;  %v62_v7 = vmul.f32 1.442695, %v59_v5  ;;  %v68_v44 = vsub.f32 %v64_v36, %v66_v37  ;;  %v69_v49 = vsub.f32 %v65_v38, %v67_v39  ;;  %p385_p2 = scmp.ne.s32.totalorder %s310_s4, %s384_s5  ;;  %p390_p4 = scmp.lt.s32.totalorder %s384_s5, %s384_s5 }
  0x2b   :  { %v110_v54 = vadd.f32 0.75, %v108_v45  ;;  %v111_v59 = vadd.f32 0.75, %v109_v51 }
  0x2c   :  { %324 = vpow2.f32 %v60_v6  ;;  %p391_p5 = por %p390_p4, %p389_p3 }
  0x2d   :  { %326 = vpow2.f32 %v62_v7 }
  0x2e   :  { %p392_p6 = pnand %p391_p5, %p385_p2 }
  0x36   :  { %v325_v8 = vpop.eup %324 }
  0x37   :  { %v327_v9 = vpop.eup %326  ;;  %v70_v10 = vadd.f32 1.0, %v325_v8  ;;  %v73_v22 = vmul.f32 -0.5, %v325_v8  ;;  %v76_v31 = vand.u32 2147483647, %v325_v8 }
  0x38   :  { %v79_v11 = vadd.f32 1.0, %v327_v9  ;;  %v82_v24 = vmul.f32 -0.5, %v327_v9  ;;  %v85_v35 = vand.u32 2147483647, %v327_v9 }
  0x39   :  { %328 = vrcp.f32 %v70_v10  ;;  %v74_v28 = vadd.f32 1.0, %v73_v22  ;;  %vm77_vm2 = vcmp.lt.f32.partialorder %v76_v31, 0.0004427343 }
  0x3a   :  { %330 = vrcp.f32 %v79_v11  ;;  %v83_v32 = vadd.f32 1.0, %v82_v24  ;;  %vm86_vm3 = vcmp.lt.f32.partialorder %v85_v35, 0.0004427343 }
  0x3b   :  { %332 = vlog2.f32 %v70_v10  ;;  %v75_v41 = vmul.f32 %v325_v8, %v74_v28 }
  0x3c   :  { %334 = vlog2.f32 %v79_v11  ;;  %v84_v43 = vmul.f32 %v327_v9, %v83_v32  ;;  %v415_v11 = vmov 1966171168  }
  0x43   :  { %v329_v12 = vpop.eup %328 }
  0x44   :  { %v331_v13 = vpop.eup %330  ;;  %v96_v14 = vmul.f32 %v329_v12, %v325_v8  ;;  %v151_v8 = vsub.s32 %v148_v55, %v456_v56 }
  0x45   :  { %v97_v15 = vmul.f32 %v331_v13, %v327_v9  ;;  %v333_v30 = vpop.eup %332 }
  0x46   :  { %v98_v16 = vsel %vm94_vm0, %v329_v12, %v96_v14  ;;  %v335_v34 = vpop.eup %334  ;;  %v72_v40 = vmul.f32 0.6931472, %v333_v30  ;;  %v257_v12 = vunpack.c.l.s4 %v415_v11 }
  0x47   :  { %v99_v17 = vsel %vm95_vm1, %v331_v13, %v97_v15  ;;  %v100_v18 = vmul.f32 2.0, %v98_v16  ;;  %v81_v42 = vmul.f32 0.6931472, %v335_v34 }
  0x48   :  { %v101_v20 = vmul.f32 2.0, %v99_v17  ;;  %v78_v50 = vsel %vm77_vm2, %v75_v41, %v72_v40 }
  0x49   :  { %v102_v23 = vsub.f32 1.0, %v100_v18  ;;  %v87_v52 = vsel %vm86_vm3, %v84_v43, %v81_v42  ;;  %v88_v53 = vadd.f32 %v78_v50, %v68_v44 }
  0x4a   :  { %v103_v25 = vsub.f32 1.0, %v101_v20  ;;  %v89_v58 = vadd.f32 %v87_v52, %v69_v49 }
  0x4b   :  { %v104_v26 = vmul.f32 %v102_v23, %v54_v19  ;;  %v128_v2 = vmul.f32 %v110_v54, %v88_v53 }
  0x4c   :  { %v105_v27 = vmul.f32 %v103_v25, %v55_v21  ;;  %v129_v5 = vmul.f32 %v111_v59, %v89_v58  ;;  %v258_v21 = vunpack.c.0.s8 %v257_v12 }
  0x4d   :  { %v106_v29 = vadd.f32 %v104_v26, %v98_v16 }
  0x4e   :  { %v107_v33 = vadd.f32 %v105_v27, %v99_v17 }
  0x4f   :  { %336 = vrsqrt.f32 %v106_v29  ;;  %vm114_vm4 = vcmp.eq.f32.partialorder %v106_v29, inf  ;;  %v117_v60 = vand.u32 2147483648, %v106_v29  ;;  %vm116_vm5 = vcmp.eq.f32.partialorder %v106_v29, 0.0 }
  0x50   :  { %338 = vrsqrt.f32 %v107_v33  ;;  %vm121_vm6 = vcmp.eq.f32.partialorder %v107_v33, inf  ;;  %v124_v63 = vand.u32 2147483648, %v107_v33  ;;  %vm123_vm7 = vcmp.eq.f32.partialorder %v107_v33, 0.0 }
  0x59   :  { %v337_v57 = vpop.eup %336 }
  0x5a   :  { %v339_v61 = vpop.eup %338  ;;  %v113_v62 = vmul.f32 %v337_v57, %v106_v29 }
  0x5b   :  { %v120_v0 = vmul.f32 %v339_v61, %v107_v33 }
  0x5c   :  { %v115_v1 = vsel %vm114_vm4, %v106_v29, %v113_v62 }
  0x5d   :  { %v118_v3 = vsel %vm116_vm5, %v117_v60, %v115_v1  ;;  %v122_v4 = vsel %vm121_vm6, %v107_v33, %v120_v0 }
  0x5e   :  { %v125_v6 = vsel %vm123_vm7, %v124_v63, %v122_v4  ;;  %v126_v7 = vmul.f32 %v118_v3, %v106_v29 }
  0x5f   :  { %v127_v9 = vmul.f32 %v125_v6, %v107_v33 }
  0x60   :  { %v130_v10 = vmul.f32 %v128_v2, %v126_v7 }
  0x61   :  { %v131_v13 = vmul.f32 %v129_v5, %v127_v9  ;;  %v261_v9 = vsub.s32 %v258_v21, %v456_v56 }
  0x62   :  { %v145_v14 = vcombine.high %v130_v10, %v130_v10  ;;  %v152_v15 = vrot.slane %v130_v10, %v151_v8 }
  0x63   :  { %v162_v16 = vcombine.high %v131_v13, %v131_v13  ;;  %v169_v17 = vrot.slane %v131_v13, %v151_v8 }
  0x64   :  { %v159_v18 = vrot.slane %v145_v14, %v151_v8  ;;  %v160_v19 = vcombine.high %v152_v15, %v152_v15  ;;  %v188_v20 = vsel %vm187_vm8, %v152_v15, 0.0 }
  0x65   :  { %v176_v22 = vrot.slane %v162_v16, %v151_v8  ;;  %v177_v23 = vcombine.high %v169_v17, %v169_v17  ;;  %v189_v24 = vrot.slane %v188_v20, 4  ;;  %v216_v25 = vsel %vm187_vm8, %v169_v17, 0.0 }
  0x66   :  { %v161_v26 = vcombine.high %v159_v18, %v159_v18  ;;  %v195_v27 = vsel %vm187_vm8, %v160_v19, 0.0  ;;  %v202_v28 = vsel %vm187_vm8, %v159_v18, 0.0  ;;  %v217_v29 = vrot.slane %v216_v25, 4 }
  0x67   :  { %v178_v30 = vcombine.high %v176_v22, %v176_v22  ;;  %v190_v31 = vadd.f32 %v189_v24, %v188_v20  ;;  %v196_v32 = vrot.slane %v195_v27, 4  ;;  %v203_v33 = vrot.slane %v202_v28, 4 }
  0x68   :  { %v209_v34 = vsel %vm187_vm8, %v161_v26, 0.0  ;;  %v218_v35 = vadd.f32 %v217_v29, %v216_v25  ;;  %v223_v36 = vsel %vm187_vm8, %v177_v23, 0.0  ;;  %v230_v37 = vsel %vm187_vm8, %v176_v22, 0.0 }
  0x69   :  { %v191_v38 = vrot.slane %v190_v31, 2  ;;  %v197_v39 = vadd.f32 %v196_v32, %v195_v27  ;;  %v204_v40 = vadd.f32 %v203_v33, %v202_v28  ;;  %v210_v41 = vrot.slane %v209_v34, 4 }
  0x6a   :  { %v219_v42 = vrot.slane %v218_v35, 2  ;;  %v224_v43 = vrot.slane %v223_v36, 4  ;;  %v231_v44 = vrot.slane %v230_v37, 4  ;;  %v237_v45 = vsel %vm187_vm8, %v178_v30, 0.0 }
  0x6b   :  { %v192_v46 = vadd.f32 %v191_v38, %v190_v31  ;;  %v198_v47 = vrot.slane %v197_v39, 2  ;;  %v205_v48 = vrot.slane %v204_v40, 2  ;;  %v211_v49 = vadd.f32 %v210_v41, %v209_v34 }
  0x6c   :  { %v220_v50 = vadd.f32 %v219_v42, %v218_v35  ;;  %v225_v51 = vadd.f32 %v224_v43, %v223_v36  ;;  %v232_v52 = vadd.f32 %v231_v44, %v230_v37  ;;  %v238_v53 = vrot.slane %v237_v45, 4 }
  0x6d   :  { %v193_v54 = vrot.slane %v192_v46, 1  ;;  %v199_v55 = vadd.f32 %v198_v47, %v197_v39  ;;  %v206_v57 = vadd.f32 %v205_v48, %v204_v40  ;;  %v212_v58 = vrot.slane %v211_v49, 2 }
  0x6e   :  { %v221_v59 = vrot.slane %v220_v50, 1  ;;  %v226_v60 = vrot.slane %v225_v51, 2  ;;  %v233_v61 = vrot.slane %v232_v52, 2  ;;  %v239_v62 = vadd.f32 %v238_v53, %v237_v45 }
  0x6f   :  { %v194_v63 = vadd.f32 %v193_v54, %v192_v46  ;;  %v200_v0 = vrot.slane %v199_v55, 1  ;;  %v207_v1 = vrot.slane %v206_v57, 1  ;;  %v213_v2 = vadd.f32 %v212_v58, %v211_v49 }
  0x70   :  { %v227_v3 = vadd.f32 %v226_v60, %v225_v51  ;;  %v234_v4 = vadd.f32 %v233_v61, %v232_v52  ;;  %v240_v5 = vrot.slane %v239_v62, 2  ;;  %v222_v10 = vadd.f32 %v221_v59, %v220_v50 }
  0x71   :  { %v201_v6 = vadd.f32 %v200_v0, %v199_v55  ;;  %v208_v7 = vadd.f32 %v207_v1, %v206_v57  ;;  %v214_v8 = vrot.slane %v213_v2, 1 }
  0x72   :  { %v228_v11 = vrot.slane %v227_v3, 1  ;;  %v235_v12 = vrot.slane %v234_v4, 1  ;;  %v241_v13 = vadd.f32 %v240_v5, %v239_v62 }
  0x73   :  { %v215_v14 = vadd.f32 %v214_v8, %v213_v2  ;;  %v252_v15 = vcombine.low %v194_v63, %v201_v6 }
  0x74   :  { %v229_v16 = vadd.f32 %v228_v11, %v227_v3  ;;  %v236_v17 = vadd.f32 %v235_v12, %v234_v4  ;;  %v242_v18 = vrot.slane %v241_v13, 1 }
  0x75   :  { %v253_v19 = vcombine.low %v208_v7, %v215_v14  ;;  %v262_v20 = vrot.slane %v252_v15, %v261_v9 }
  0x76   :  { %v243_v22 = vadd.f32 %v242_v18, %v241_v13  ;;  %v254_v23 = vcombine.low %v222_v10, %v229_v16 }
  0x77   :  { %v269_v24 = vrot.slane %v253_v19, %v261_v9 }
  0x78   :  { %v255_v25 = vcombine.low %v236_v17, %v243_v22  ;;  %v276_v26 = vrot.slane %v254_v23, %v261_v9 }
  0x79   :  { %v284_v27 = vcombine.low %v262_v20, %v269_v24 }
  0x7a   :  { %v283_v28 = vrot.slane %v255_v25, %v261_v9 }
  0x7b   :  { %v292_v56 = vrot.slane %v284_v27, %v261_v9 }
  0x7c   :  { %v285_v29 = vcombine.low %v276_v26, %v283_v28 }
  0x7e   :  { %v299_v21 = vrot.slane %v285_v29, %v261_v9 }
  0x80   :  { %v300_v30 = vcombine.low %v292_v56, %v299_v21 }
  0x82   :  { %302 = vst [vmem:[#allocation8] sm:$0xff] %v300_v30 }
  0x83   :  { %395 = shalt.err (!%p392_p6)
}
  0x84   :  { %s396_s8 = scalar_lea.hbm %s482_s2, 128 }
  0x85   :  { %p397_p7 = scmp.ne.s32.totalorder %s482_s2, %s396_s8  ;;  %p400_p8 = scmp.lt.u32.totalorder %s396_s8, %s482_s2 }
  0x87   :  { %p402_p9 = pnand %p400_p8, %p397_p7 }
  0x89   :  { %405 = shalt.err (!%p402_p9)
}
  0x8a   :  { %312 = dma.vmem_to_hbm [thread:$0]  %s310_s4, 128, %s482_s2, [#allocation5]  }
  0x8b   :  { %410 = dma.done.wait [#allocation5], 128  }
  0x8c   :  { %411 = vsyncadd [#allocation5], 4294967168 }
  0x8d   :  { %316 = vsyncpa [#allocation4], 1 }
  0x8e   :  { %317 = vsyncpa [#allocation7], 1 }
  0x8f   :  { %318 = vsyncpa [#allocation5], 1 }

</bundles_post_ra>
